<compile_context>
chip_gen: v6e
topology: v6e:2x2x1
jax: 0.10.0
libtpu: 0.0.40
codegen_flags: <defaults>
</compile_context>

<pallas_src>
import functools

import jax
import jax.numpy as jnp
from jax.experimental import pallas as pl
from jax.experimental.pallas import tpu as pltpu


def _round_up(x: int, m: int) -> int:
    return ((x + m - 1) // m) * m


def _vmem_cap_bytes() -> int:
    """3/4 of physical VMEM per core; conservative fallback if unqueryable."""
    try:
        phys = int(pltpu.get_tpu_info().vmem_capacity_bytes)
    except Exception:
        phys = 64 * 1024 * 1024
    return (phys * 3) // 4


def _fold_chunks(x_ref, y_ref, dacc_ref, tacc_ref, chunks, p):
    """Accumulate sum(|x-y|^p) and sum(|y|^p) lane-wise over 128-lane chunks.

    `chunks` is a static list of (chunk_index, valid_lanes) where valid_lanes
    is None for a fully-valid chunk or an int < 128 for the straddling chunk.
    Only (tile_n, 128) f32 tiles are live at any time.
    """
    dsum = None
    tsum = None
    for c, valid in chunks:
        sl = slice(c * 128, (c + 1) * 128)
        x = x_ref[:, sl].astype(jnp.float32)
        y = y_ref[:, sl].astype(jnp.float32)
        if valid is not None:
            lane = jax.lax.broadcasted_iota(jnp.int32, x.shape, dimension=1)
            m = lane < valid
            x = jnp.where(m, x, 0.0)
            y = jnp.where(m, y, 0.0)
        d = x - y
        if p == 2:
            dc = d * d
            tc = y * y
        else:
            dc = jnp.abs(d) ** p
            tc = jnp.abs(y) ** p
        dsum = dc if dsum is None else dsum + dc
        tsum = tc if tsum is None else tsum + tc
    dacc_ref[...] += dsum
    tacc_ref[...] += tsum


def _scaled_lp_kernel(x_ref, y_ref, out_ref, dacc_ref, tacc_ref, *,
                      p, block_s, s_rem, num_s_blocks):
    k = pl.program_id(1)  # S (reduction) axis, trailing grid dim

    @pl.when(k == 0)
    def _():
        dacc_ref[...] = jnp.zeros_like(dacc_ref)
        tacc_ref[...] = jnp.zeros_like(tacc_ref)

    nchunks = block_s // 128
    full_chunks = [(c, None) for c in range(nchunks)]

    if s_rem == 0:
        # Every S block is fully valid: one unmasked fold path.
        _fold_chunks(x_ref, y_ref, dacc_ref, tacc_ref, full_chunks, p)
    else:
        # Tail block: statically skip fully-OOB chunks, mask only the
        # straddling chunk.
        tail_full = s_rem // 128
        part = s_rem % 128
        tail_chunks = [(c, None) for c in range(tail_full)]
        if part:
            tail_chunks.append((tail_full, part))

        if num_s_blocks == 1:
            _fold_chunks(x_ref, y_ref, dacc_ref, tacc_ref, tail_chunks, p)
        else:
            last = num_s_blocks - 1

            @pl.when(k < last)
            def _():
                _fold_chunks(x_ref, y_ref, dacc_ref, tacc_ref, full_chunks, p)

            @pl.when(k == last)
            def _():
                _fold_chunks(x_ref, y_ref, dacc_ref, tacc_ref, tail_chunks, p)

    @pl.when(k == num_s_blocks - 1)
    def _():
        dtot = jnp.sum(dacc_ref[...], axis=-1, keepdims=True)
        ttot = jnp.sum(tacc_ref[...], axis=-1, keepdims=True)
        ratio = dtot / ttot          # exact divide; cheap epilogue
        if p == 2:
            out_ref[...] = jnp.sqrt(ratio)
        else:
            out_ref[...] = ratio ** (1.0 / p)


def scaled_lp_loss(inp, tgt, p: int = 2, reduction: str = "mean",
                   tile_n: int = 256, block_s: int = 2048):
    assert inp.ndim == 5 and tgt.ndim == 5
    B, T, C, H, W = inp.shape
    N = B * T * C
    S = H * W

    x = inp.reshape(N, S)
    y = tgt.reshape(N, S)

    itemsize = max(jnp.dtype(x.dtype).itemsize, jnp.dtype(y.dtype).itemsize)
    # Dtype-aware sublane multiple: f32 -> 8, bf16 -> 16, int8/fp8 -> 32.
    sub = {4: 8, 2: 16, 1: 32}.get(itemsize, 8)

    # S tiling: multiple of 128, clamped to the (padded) problem size.
    block_s = _round_up(min(block_s, _round_up(S, 128)), 128)
    num_s_blocks = pl.cdiv(S, block_s)
    s_rem = S % block_s

    # Row tiling: multiple of `sub`; ensure >= 2 row blocks when possible so
    # the "parallel" axis shards across both TensorCores on v7x.
    n_padded = _round_up(N, sub)
    tile_n = min(tile_n, n_padded)
    if n_padded > sub:
        tile_n = min(tile_n, _round_up(pl.cdiv(N, 2), sub))
    tile_n = _round_up(tile_n, sub)
    num_n_blocks = pl.cdiv(N, tile_n)

    kernel = functools.partial(_scaled_lp_kernel, p=p, block_s=block_s,
                               s_rem=s_rem, num_s_blocks=num_s_blocks)

    # VMEM estimate: 2 inputs x 2 pipeline buffers + 2 lane accumulators +
    # a little for the chunked f32 working set / output.
    vmem_need = (4 * tile_n * block_s * itemsize
                 + 2 * tile_n * 128 * 4
                 + 8 * tile_n * 128 * 4)
    vmem_limit = int(min(_vmem_cap_bytes(),
                         max(32 * 1024 * 1024, 2 * vmem_need)))

    val = pl.pallas_call(
        kernel,
        out_shape=jax.ShapeDtypeStruct((N, 1), jnp.float32),
        grid_spec=pltpu.PrefetchScalarGridSpec(
            num_scalar_prefetch=0,
            grid=(num_n_blocks, num_s_blocks),
            in_specs=[
                pl.BlockSpec((tile_n, block_s), lambda i, k: (i, k)),
                pl.BlockSpec((tile_n, block_s), lambda i, k: (i, k)),
            ],
            out_specs=pl.BlockSpec((tile_n, 1), lambda i, k: (i, 0)),
            scratch_shapes=[
                pltpu.VMEM((tile_n, 128), jnp.float32),
                pltpu.VMEM((tile_n, 128), jnp.float32),
            ],
        ),
        compiler_params=pltpu.CompilerParams(
            dimension_semantics=("parallel", "arbitrary"),
            vmem_limit_bytes=vmem_limit,
        ),
    )(x, y)

    val = val.reshape(B, T, C)

    if reduction == "mean":
        return jnp.mean(val)
    elif reduction == "sum":
        return jnp.sum(val)
    elif reduction == "none":
        return val
    else:
        raise NotImplementedError(reduction)


class ScaledLpLoss:
    """Scaled Lp loss for PDEs (Pallas TPU implementation)."""

    def __init__(self, p: int = 2, reduction: str = "mean") -> None:
        self.p = p
        self.reduction = reduction

    def __call__(self, inp, tgt):
        return scaled_lp_loss(inp, tgt, p=self.p, reduction=self.reduction)


def _reference(inp, tgt, p=2, reduction="mean"):
    x = inp.reshape(*inp.shape[:3], -1).astype(jnp.float32)
    y = tgt.reshape(*tgt.shape[:3], -1).astype(jnp.float32)
    dn = jnp.sum(jnp.abs(x - y) ** p, axis=-1) ** (1.0 / p)
    tn = jnp.sum(jnp.abs(y) ** p, axis=-1) ** (1.0 / p)
    val = dn / tn
    if reduction == "mean":
        return jnp.mean(val)
    if reduction == "sum":
        return jnp.sum(val)
    return val


if __name__ == "__main__":
    key = jax.random.PRNGKey(0)
    k1, k2, k3, k4, k5, k6 = jax.random.split(key, 6)

    # Test 1: even spatial tiling (S = 256, single S block), mean reduction.
    B, T, C, H, W = 2, 3, 4, 16, 16
    inp = jax.random.normal(k1, (B, T, C, H, W), dtype=jnp.float32)
    tgt = jax.random.normal(k2, (B, T, C, H, W), dtype=jnp.float32)
    out = ScaledLpLoss(p=2, reduction="mean")(inp, tgt)
    jax.block_until_ready(out)
    ref = _reference(inp, tgt, p=2, reduction="mean")
    assert jnp.allclose(out, ref, rtol=1e-5, atol=1e-5), (out, ref)

    # Test 2: ragged spatial dim (S = 100 -> masked straddling chunk), 'none'.
    H2, W2 = 10, 10
    inp2 = jax.random.normal(k3, (B, T, C, H2, W2), dtype=jnp.float32)
    tgt2 = jax.random.normal(k4, (B, T, C, H2, W2), dtype=jnp.float32)
    out2 = ScaledLpLoss(p=2, reduction="none")(inp2, tgt2)
    jax.block_until_ready(out2)
    ref2 = _reference(inp2, tgt2, p=2, reduction="none")
    assert jnp.allclose(out2, ref2, rtol=1e-5, atol=1e-5), (out2, ref2)

    # Test 3: S > block_s with a ragged tail (multi-block reduction axis +
    # gated tail masking), 'sum' reduction.
    H3, W3 = 46, 46  # S = 2116 = 2048 + 68
    inp3 = jax.random.normal(k5, (B, T, C, H3, W3), dtype=jnp.float32)
    tgt3 = jax.random.normal(k6, (B, T, C, H3, W3), dtype=jnp.float32)
    out3 = ScaledLpLoss(p=2, reduction="sum")(inp3, tgt3)
    jax.block_until_ready(out3)
    ref3 = _reference(inp3, tgt3, p=2, reduction="sum")
    assert jnp.allclose(out3, ref3, rtol=1e-5, atol=1e-5), (out3, ref3)

    print("KERNEL_OK")
</pallas_src>

<mosaic_0001>
module attributes {stable_mosaic.version = 11 : i64} {
  func.func @_scaled_lp_kernel(%arg0: i32, %arg1: i32, %arg2: memref<16x256xf32, #tpu.memory_space<vmem>>, %arg3: memref<16x256xf32, #tpu.memory_space<vmem>>, %arg4: memref<16x1xf32, #tpu.memory_space<vmem>>, %arg5: memref<16x128xf32, #tpu.memory_space<vmem>>, %arg6: memref<16x128xf32, #tpu.memory_space<vmem>>) attributes {dimension_semantics = [#tpu.dimension_semantics<parallel>, #tpu.dimension_semantics<arbitrary>], iteration_bounds = array<i64: 2, 1>, scalar_prefetch = 0 : i64, scratch_operands = 2 : i64, tpu.core_type = #tpu.core_type<tc>, window_params = [{transform_indices = @transform_0, window_bounds = array<i64: 16, 256>}, {transform_indices = @transform_1, window_bounds = array<i64: 16, 256>}, {transform_indices = @transform_2, window_bounds = array<i64: 16, 1>}]} {
    %c0_i32 = arith.constant 0 : i32
    %0 = arith.cmpi eq, %arg1, %c0_i32 : i32
    %1 = arith.extui %0 : i1 to i32
    %c0_i32_0 = arith.constant 0 : i32
    %2 = arith.cmpi ne, %1, %c0_i32_0 : i32
    scf.if %2 {
      %cst = arith.constant 0.000000e+00 : f32
      %24 = vector.broadcast %cst : f32 to vector<16x128xf32>
      %c0_17 = arith.constant 0 : index
      %c0_18 = arith.constant 0 : index
      %25 = vector.load %arg5[%c0_17, %c0_18] : memref<16x128xf32, #tpu.memory_space<vmem>>, vector<16x128xf32>
      tpu.vector_store %arg5[%c0_17, %c0_18], %24 {strides = array<i32>} : memref<16x128xf32, #tpu.memory_space<vmem>>, vector<16x128xf32>,
      %cst_19 = arith.constant 0.000000e+00 : f32
      %26 = vector.broadcast %cst_19 : f32 to vector<16x128xf32>
      %c0_20 = arith.constant 0 : index
      %c0_21 = arith.constant 0 : index
      %27 = vector.load %arg6[%c0_20, %c0_21] : memref<16x128xf32, #tpu.memory_space<vmem>>, vector<16x128xf32>
      tpu.vector_store %arg6[%c0_20, %c0_21], %26 {strides = array<i32>} : memref<16x128xf32, #tpu.memory_space<vmem>>, vector<16x128xf32>,
    } else {
    }
    %c0 = arith.constant 0 : index
    %c0_1 = arith.constant 0 : index
    %3 = vector.load %arg2[%c0, %c0_1] : memref<16x256xf32, #tpu.memory_space<vmem>>, vector<16x128xf32>
    %c0_2 = arith.constant 0 : index
    %c0_3 = arith.constant 0 : index
    %4 = vector.load %arg3[%c0_2, %c0_3] : memref<16x256xf32, #tpu.memory_space<vmem>>, vector<16x128xf32>
    %5 = arith.subf %3, %4 : vector<16x128xf32>
    %6 = arith.mulf %5, %5 : vector<16x128xf32>
    %7 = arith.mulf %4, %4 : vector<16x128xf32>
    %c0_4 = arith.constant 0 : index
    %c128 = arith.constant 128 : index
    %8 = vector.load %arg2[%c0_4, %c128] : memref<16x256xf32, #tpu.memory_space<vmem>>, vector<16x128xf32>
    %c0_5 = arith.constant 0 : index
    %c128_6 = arith.constant 128 : index
    %9 = vector.load %arg3[%c0_5, %c128_6] : memref<16x256xf32, #tpu.memory_space<vmem>>, vector<16x128xf32>
    %10 = arith.subf %8, %9 : vector<16x128xf32>
    %11 = arith.mulf %10, %10 : vector<16x128xf32>
    %12 = arith.mulf %9, %9 : vector<16x128xf32>
    %13 = arith.addf %6, %11 : vector<16x128xf32>
    %14 = arith.addf %7, %12 : vector<16x128xf32>
    %c0_7 = arith.constant 0 : index
    %c0_8 = arith.constant 0 : index
    %15 = vector.load %arg5[%c0_7, %c0_8] : memref<16x128xf32, #tpu.memory_space<vmem>>, vector<16x128xf32>
    %16 = arith.addf %15, %13 : vector<16x128xf32>
    %c0_9 = arith.constant 0 : index
    %c0_10 = arith.constant 0 : index
    %17 = vector.load %arg5[%c0_9, %c0_10] : memref<16x128xf32, #tpu.memory_space<vmem>>, vector<16x128xf32>
    tpu.vector_store %arg5[%c0_9, %c0_10], %16 {strides = array<i32>} : memref<16x128xf32, #tpu.memory_space<vmem>>, vector<16x128xf32>,
    %c0_11 = arith.constant 0 : index
    %c0_12 = arith.constant 0 : index
    %18 = vector.load %arg6[%c0_11, %c0_12] : memref<16x128xf32, #tpu.memory_space<vmem>>, vector<16x128xf32>
    %19 = arith.addf %18, %14 : vector<16x128xf32>
    %c0_13 = arith.constant 0 : index
    %c0_14 = arith.constant 0 : index
    %20 = vector.load %arg6[%c0_13, %c0_14] : memref<16x128xf32, #tpu.memory_space<vmem>>, vector<16x128xf32>
    tpu.vector_store %arg6[%c0_13, %c0_14], %19 {strides = array<i32>} : memref<16x128xf32, #tpu.memory_space<vmem>>, vector<16x128xf32>,
    %c0_i32_15 = arith.constant 0 : i32
    %21 = arith.cmpi eq, %arg1, %c0_i32_15 : i32
    %22 = arith.extui %21 : i1 to i32
    %c0_i32_16 = arith.constant 0 : i32
    %23 = arith.cmpi ne, %22, %c0_i32_16 : i32
    scf.if %23 {
      %c0_17 = arith.constant 0 : index
      %c0_18 = arith.constant 0 : index
      %24 = vector.load %arg5[%c0_17, %c0_18] : memref<16x128xf32, #tpu.memory_space<vmem>>, vector<16x128xf32>
      %cst = arith.constant dense<0.000000e+00> : vector<16xf32>
      %25 = vector.multi_reduction <add>, %24, %cst [1] : vector<16x128xf32> to vector<16xf32>
      %26 = vector.shape_cast %25 : vector<16xf32> to vector<16x1xf32>
      %c0_19 = arith.constant 0 : index
      %c0_20 = arith.constant 0 : index
      %27 = vector.load %arg6[%c0_19, %c0_20] : memref<16x128xf32, #tpu.memory_space<vmem>>, vector<16x128xf32>
      %cst_21 = arith.constant dense<0.000000e+00> : vector<16xf32>
      %28 = vector.multi_reduction <add>, %27, %cst_21 [1] : vector<16x128xf32> to vector<16xf32>
      %29 = vector.shape_cast %28 : vector<16xf32> to vector<16x1xf32>
      %30 = arith.divf %26, %29 : vector<16x1xf32>
      %31 = math.sqrt %30 : vector<16x1xf32>
      %c0_22 = arith.constant 0 : index
      %c0_23 = arith.constant 0 : index
      %32 = vector.load %arg4[%c0_22, %c0_23] : memref<16x1xf32, #tpu.memory_space<vmem>>, vector<16x1xf32>
      tpu.vector_store %arg4[%c0_22, %c0_23], %31 {strides = array<i32>} : memref<16x1xf32, #tpu.memory_space<vmem>>, vector<16x1xf32>,
    } else {
    }
    return
  }
  func.func @transform_0(%arg0: i32, %arg1: i32) -> (i32, i32) {
    %c0_i32 = arith.constant 0 : i32
    return %arg0, %arg1 : i32, i32
  }
  func.func @transform_1(%arg0: i32, %arg1: i32) -> (i32, i32) {
    %c0_i32 = arith.constant 0 : i32
    return %arg0, %arg1 : i32, i32
  }
  func.func @transform_2(%arg0: i32, %arg1: i32) -> (i32, i32) {
    %c0_i32 = arith.constant 0 : i32
    %c0_i32_0 = arith.constant 0 : i32
    return %arg0, %c0_i32 : i32, i32
  }
}

</mosaic_0001>

<bundles_post_ra>
// kernel: tpu_custom_call.1
= control target key start
LH: loop header
LB: loop body
LE: loop exit
PB: predicated region body
PF: predicated region fallthrough
CT: control target
= control target key end

     0   :  { %7 = vsyncpa [#allocation5], 0  ;;  %s1175_s0 = inlined_call_operand.hbm [shape: f32[24,256], index: 0, kind: input, shape index: {}]   ;;  %s1176_s1 = inlined_call_operand.hbm [shape: f32[24,256], index: 1, kind: input, shape index: {}]   ;;  %s1177_s2 = inlined_call_operand.vmem [shape: f32[24,1], index: 2, kind: output, shape index: {}]  }
   0x1   :  { %9 = vsyncpa [#allocation5 + $0x1], 0 }
   0x2   :  { %10 = vsyncpa [#allocation7], 0 }
   0x3   :  { %12 = vsyncpa [#allocation7 + $0x1], 0  ;;  %s972_s9 = smov 0   ;;  %s974_s10 = smov 0  }
   0x4   :  { %s976_s11 = smov 0   ;;  %s978_s12 = smov 0  }
   0x5   :  { %s980_s13 = smov 0   ;;  %s982_s14 = smov 0  }
   0x6 LB: > { %s601_s15 = sadd.s32 4294967295, %s917_s14   ;;  %s30_s16 = sadd.s32 1, %s913_s13  ;;  %s917_s14 = sphi %s982_s14, %s18_s14   ;;  %s913_s13 = sphi %s980_s13, %s1185_s13   ;;  %s909_s12 = sphi %s978_s12, %s1184_s12   ;;  %s905_s11 = sphi %s976_s11, %s1183_s11   ;;  %s901_s10 = sphi %s974_s10, %s1182_s10   ;;  %s897_s9 = sphi %s972_s9, %s1181_s9  }
   0x7   : > { %p32_p0 = scmp.ge.s32.totalorder %s30_s16, 2  ;;  %s39_s17 = sadd.s32 1, %s905_s11 }
   0x8   : > { %p46_p1 = scmp.ne.s32.totalorder %s905_s11, %s901_s10  ;;  %p47_p2 = scmp.eq.s32.totalorder %s917_s14, 0 }
   0x9   : > { %s1187_s16 = smov (%p32_p0, %s30_s16), 0  ;;  %p52_p4 = scmp.ne.s32.totalorder %s901_s10, %s897_s9 }
   0xa   : > { %p1008_p3 = por %p47_p2, %p46_p1  ;;  %s34_s19 = ssub.s32 %s913_s13, %s1187_s16 }
   0xb   : > { %p53_p5 = scmp.eq.s32.totalorder %s601_s15, 0  ;;  %p37_p6 = scmp.eq.s32.totalorder %s34_s19, 0 }
   0xc   : > { %p104_p7 = scmp.eq.s32.totalorder %s601_s15, 1  ;;  %p604_p10 = scmp.ge.s32.totalorder %s917_s14, 2 }
   0xd   : > { %p1015_p8 = por %p53_p5, %p52_p4 }
   0xe   : > { %s1020_s21 = scalar_select %p37_p6, %s905_s11, %s39_s17  }
   0xf   : > { %p1022_p9 = por %p104_p7, %p46_p1  ;;  %126 = sbr.rel (%p604_p10) target bundleno = 84 (0x54), region = 16 }
  0x14   : > { %129 = sbr.rel (!%p1008_p3) target bundleno = 52 (0x34), region = 20  ;;  %s130_s23 = sand.u32 (%p1008_p3), 1, %s905_s11  }
  0x15   : > { %s606_s24 = sshll.u32 (%p1008_p3), %s913_s13, 1  ;;  %s605_s25 = sshll.u32 (%p1008_p3), %s130_s23, 5 }
  0x16   : > { %s137_s26 = ssub.s32 (%p1008_p3), 3, %s606_s24  ;;  %s1034_s29 = scalar_lea.sflag (%p1008_p3), [#allocation5], %s130_s23 }
  0x17   : > { %p138_p11 = scmp.lt.s32.totalorder (%p1008_p3), %s137_s26, 2  ;;  %s134_s30 = scalar_lea.vmem (%p1008_p3), [#allocation4], %s605_s25 }
  0x19   : > { %s1189_s26 = smov (!%p138_p11, %s137_s26), 2 }
  0x1a   : > { %s1031_s27 = sshll.u32 %s1189_s26, 8 }
  0x1b   : > { %s143_s28 = ssub.s32 512, %s1031_s27 }
  0x1c   : > { %144 = vsyncadd %s1034_s29, %s143_s28  ;;  %p609_p12 = scmp.ne.s32.totalorder %s1031_s27, 0  ;;  %s646_s3 = sshll.u32 %s913_s13, 9 }
  0x1d   : > { %s1042_s6 = scalar_lea.hbm %s1175_s0, %s646_s3  ;;  %s151_s7 = sshll.u32 %s134_s30, 4  ;;  %s1044_s7 = int_to_ptr.vmem [resolvable:$true] %s151_s7 }
  0x1e   : > { %s779_s8 = scalar_lea.hbm %s1042_s6, %s1031_s27  ;;  %s783_s17 = scalar_lea.hbm %s1175_s0, 768 }
  0x1f   : > { %p780_p13 = scmp.ne.s32.totalorder %s1042_s6, %s779_s8  ;;  %p785_p2 = scmp.lt.s32.totalorder %s783_s17, %s779_s8 }
  0x21   : > { %p781_p0 = pnand %p780_p13, %p609_p12 }
  0x23   : > { %p782_p1 = pneg %p781_p0 }
  0x25   : > { %p787_p4 = pnand %p785_p2, %p782_p1 }
  0x27   : > { %790 = shalt.err (!%p787_p4)
}
  0x28   : > { %s791_s19 = scalar_lea.vmem %s1044_s7, %s1031_s27  ;;  %s951_s23 = smov [#allocation4]  }
  0x29   : > { %p792_p5 = scmp.ne.s32.totalorder %s1044_s7, %s791_s19  ;;  %s795_s24 = sshll.u32 %s951_s23, 4  ;;  %s796_s24 = int_to_ptr.vmem [resolvable:$false] %s795_s24 }
  0x2a   : > { %s797_s25 = scalar_lea.vmem %s796_s24, 1024  ;;  %p798_p10 = scmp.lt.s32.totalorder %s1044_s7, %s796_s24 }
  0x2b   : > { %p793_p6 = pnand %p792_p5, %p609_p12  ;;  %p799_p11 = scmp.lt.s32.totalorder %s797_s25, %s791_s19 }
  0x2d   : > { %p794_p7 = pneg %p793_p6  ;;  %p800_p13 = por %p799_p11, %p798_p10 }
  0x2f   : > { %p801_p0 = pnand %p800_p13, %p794_p7 }
  0x31   : > { %804 = shalt.err (!%p801_p0)
}
  0x32   : > { %s952_s26 = smov 256   ;;  %s953_s28 = smov 16  }
  0x33   : > { %157 = dma.hbm_to_vmem [thread:$0]  (%p609_p12), %s1042_s6, %s1031_s27, %s1044_s7, %s1034_s29, %s952_s26, %s952_s26, %s953_s28  }
  0x34 PF: > { %160 = sbr.rel (!%p1008_p3) target bundleno = 84 (0x54), region = 24  ;;  %s161_s30 = sand.u32 (%p1008_p3), 1, %s905_s11  }
  0x35   : > { %s615_s3 = sshll.u32 (%p1008_p3), %s913_s13, 1  ;;  %s614_s4 = sshll.u32 (%p1008_p3), %s161_s30, 5 }
  0x36   : > { %s168_s5 = ssub.s32 (%p1008_p3), 3, %s615_s3  ;;  %s1073_s15 = scalar_lea.sflag (%p1008_p3), [#allocation7], %s161_s30 }
  0x37   : > { %p169_p1 = scmp.lt.s32.totalorder (%p1008_p3), %s168_s5, 2  ;;  %s165_s27 = scalar_lea.vmem (%p1008_p3), [#allocation6], %s614_s4 }
  0x39   : > { %s1191_s5 = smov (!%p169_p1, %s168_s5), 2 }
  0x3a   : > { %s1070_s8 = sshll.u32 %s1191_s5, 8 }
  0x3b   : > { %s174_s9 = ssub.s32 512, %s1070_s8 }
  0x3c   : > { %175 = vsyncadd %s1073_s15, %s174_s9  ;;  %p618_p3 = scmp.ne.s32.totalorder %s1070_s8, 0  ;;  %s649_s18 = sshll.u32 %s913_s13, 9 }
  0x3d   : > { %s1081_s7 = scalar_lea.hbm %s1176_s1, %s649_s18  ;;  %s182_s17 = sshll.u32 %s165_s27, 4  ;;  %s1083_s17 = int_to_ptr.vmem [resolvable:$true] %s182_s17 }
  0x3e   : > { %s805_s19 = scalar_lea.hbm %s1081_s7, %s1070_s8  ;;  %s809_s25 = scalar_lea.hbm %s1176_s1, 768 }
  0x3f   : > { %p806_p12 = scmp.ne.s32.totalorder %s1081_s7, %s805_s19  ;;  %p811_p5 = scmp.lt.s32.totalorder %s809_s25, %s805_s19 }
  0x41   : > { %p807_p2 = pnand %p806_p12, %p618_p3 }
  0x43   : > { %p808_p4 = pneg %p807_p2 }
  0x45   : > { %p813_p6 = pnand %p811_p5, %p808_p4 }
  0x47   : > { %816 = shalt.err (!%p813_p6)
}
  0x48   : > { %s817_s26 = scalar_lea.vmem %s1083_s17, %s1070_s8  ;;  %s954_s28 = smov [#allocation6]  }
  0x49   : > { %p818_p7 = scmp.ne.s32.totalorder %s1083_s17, %s817_s26  ;;  %s821_s30 = sshll.u32 %s954_s28, 4  ;;  %s822_s30 = int_to_ptr.vmem [resolvable:$false] %s821_s30 }
  0x4a   : > { %s823_s3 = scalar_lea.vmem %s822_s30, 1024  ;;  %p824_p13 = scmp.lt.s32.totalorder %s1083_s17, %s822_s30 }
  0x4b   : > { %p819_p10 = pnand %p818_p7, %p618_p3  ;;  %p825_p0 = scmp.lt.s32.totalorder %s823_s3, %s817_s26 }
  0x4d   : > { %p820_p11 = pneg %p819_p10  ;;  %p826_p1 = por %p825_p0, %p824_p13 }
  0x4f   : > { %p827_p12 = pnand %p826_p1, %p820_p11 }
  0x51   : > { %830 = shalt.err (!%p827_p12)
}
  0x52   : > { %s955_s4 = smov 256   ;;  %s956_s5 = smov 16  }
  0x53   : > { %188 = dma.hbm_to_vmem [thread:$0]  (%p618_p3), %s1081_s7, %s1070_s8, %s1083_s17, %s1073_s15, %s955_s4, %s955_s4, %s956_s5  }
  0x54 PF: > { %p623_p2 = scmp.ge.s32.totalorder %s917_s14, 1  ;;  %p190_p4 = scmp.lt.s32.totalorder %s917_s14, 3 }
  0x56   : > { %p191_p5 = pnand %p623_p2, %p190_p4 }
  0x57   : > { %s1108_s9 = sand.u32 (!%p191_p5), 1, %s901_s10  }
  0x58   : > { %194 = sbr.rel (%p191_p5) target bundleno = 317 (0x13d), region = 28  ;;  %s624_s27 = sshll.u32 (!%p191_p5), %s1108_s9, 5 }
  0x59   : > { %s197_s18 = scalar_lea.sflag (!%p191_p5), [#allocation5], %s1108_s9  ;;  %s200_s29 = scalar_lea.vmem (!%p191_p5), [#allocation4], %s624_s27 }
  0x5d   : > { %888 = dma.done.wait (%p1015_p8), %s197_s18, 512  }
  0x5e   : > { %890 = vsyncadd (%p1015_p8), %s197_s18, 4294966784  ;;  %s206_s8 = scalar_lea.sflag [#allocation7], %s1108_s9  ;;  %s209_s15 = scalar_lea.vmem [#allocation6], %s624_s27 }
  0x5f   : > { %892 = dma.done.wait (%p1015_p8), %s206_s8, 512  }
  0x60   : > { %894 = vsyncadd (%p1015_p8), %s206_s8, 4294966784  ;;  %v263_v0 = vld [vmem:[%s209_s15] sm:$0xff]  ;;  %v273_v1 = vld [vmem:[%s209_s15 + $0x8] sm:$0xff]  ;;  %s626_s20 = sshll.u32 %s1108_s9, 4  ;;  %vm330_vm0 = vcmask 7168   ;;  %s628_s7 = sshll.u32 (%p1022_p9), %s909_s12, 1 }
  0x61   : > { %v264_v2 = vld [vmem:[%s209_s15 + $0x10] sm:$0xff]  ;;  %v269_v3 = vmul.f32 %v263_v0, %v263_v0  ;;  %v279_v4 = vmul.f32 %v273_v1, %v273_v1  ;;  %v274_v6 = vld [vmem:[%s209_s15 + $0x18] sm:$0xff]  ;;  %v261_v7 = vld [vmem:[%s200_s29] sm:$0xff]  ;;  %s1122_s6 = scalar_lea.vmem [#allocation8], %s626_s20   ;;  %s650_s17 = sshll.u32 (%p1022_p9), %s909_s12, 4 }
  0x62   : > { %v270_v5 = vmul.f32 %v264_v2, %v264_v2  ;;  %v271_v8 = vld [vmem:[%s200_s29 + $0x8] sm:$0xff]  ;;  %v280_v9 = vmul.f32 %v274_v6, %v274_v6  ;;  %v265_v10 = vsub.f32 %v261_v7, %v263_v0  ;;  %v262_v12 = vld [vmem:[%s200_s29 + $0x10] sm:$0xff]  ;;  %v272_v13 = vld [vmem:[%s200_s29 + $0x18] sm:$0xff]  ;;  %s341_s19 = ssub.s32 (%p1022_p9), 3, %s628_s7  ;;  %s1133_s25 = scalar_lea.vmem (%p1022_p9), %s1177_s2, %s650_s17  }
  0x63   : > { %v275_v11 = vsub.f32 %v271_v8, %v273_v1  ;;  %v283_v14 = vadd.f32 %v279_v4, %v269_v3  ;;  %v266_v15 = vsub.f32 %v262_v12, %v264_v2  ;;  %v276_v16 = vsub.f32 %v272_v13, %v274_v6  ;;  %p342_p8 = scmp.lt.s32.totalorder (%p1022_p9), %s341_s19, 2 }
  0x64   : > { %v267_v17 = vmul.f32 %v265_v10, %v265_v10  ;;  %v284_v19 = vadd.f32 %v280_v9, %v270_v5 }
  0x65   : > { %v277_v18 = vmul.f32 %v275_v11, %v275_v11  ;;  %308 = vadd.xlane.f32.xlu0 %v283_v14  ;;  %v268_v20 = vmul.f32 %v266_v15, %v266_v15  ;;  %v278_v21 = vmul.f32 %v276_v16, %v276_v16 }
  0x67   : > { %v281_v22 = vadd.f32 %v277_v18, %v267_v17  ;;  %v282_v23 = vadd.f32 %v278_v21, %v268_v20 }
  0x69   : > { %302 = vadd.xlane.f32.xlu1 %v281_v22  ;;  %310 = vadd.xlane.f32.xlu0 %v284_v19 }
  0x6d   : > { %304 = vadd.xlane.f32.xlu1 %v282_v23 }
  0xee   : > { %v309_v24 = vpop.xlane.xlu0 %308 }
  0xef   : > { %771 = vrcp.f32 %v309_v24 }
  0xf2   : > { %v311_v25 = vpop.xlane.xlu0 %310  ;;  %v303_v26 = vpop.xlane.xlu1 %302 }
  0xf3   : > { %773 = vrcp.f32 %v311_v25 }
  0xf6   : > { %v305_v29 = vpop.xlane.xlu1 %304 }
  0xfc   : > { %v772_v27 = vpop.eup %771 }
  0xfd   : > { %v313_v28 = vmul.f32 %v772_v27, %v303_v26 }
  0xff   : > { %775 = vrsqrt.f32 %v313_v28  ;;  %vm318_vm1 = vcmp.eq.f32.partialorder %v313_v28, inf  ;;  %v321_v34 = vand.u32 2147483648, %v313_v28  ;;  %vm320_vm2 = vcmp.eq.f32.partialorder %v313_v28, 0.0 }
 0x100   : > { %v774_v30 = vpop.eup %773 }
 0x101   : > { %v315_v31 = vmul.f32 %v774_v30, %v305_v29 }
 0x103   : > { %777 = vrsqrt.f32 %v315_v31  ;;  %vm325_vm3 = vcmp.eq.f32.partialorder %v315_v31, inf  ;;  %v328_v39 = vand.u32 2147483648, %v315_v31  ;;  %vm327_vm4 = vcmp.eq.f32.partialorder %v315_v31, 0.0 }
 0x10c   : > { %v776_v32 = vpop.eup %775 }
 0x10d   : > { %v317_v33 = vmul.f32 %v776_v32, %v313_v28 }
 0x10f   : > { %v319_v35 = vsel %vm318_vm1, %v313_v28, %v317_v33 }
 0x110   : > { %v778_v36 = vpop.eup %777  ;;  %v322_v37 = vsel %vm320_vm2, %v321_v34, %v319_v35 }
 0x111   : > { %331 = vst.msk [vmem:[%s1122_s6] sm:$0xff] %vm330_vm0, %v322_v37  ;;  %v324_v38 = vmul.f32 %v778_v36, %v315_v31  ;;  %339 = sbr.rel (!%p1022_p9) target bundleno = 317 (0x13d), region = 48 }
 0x113   : > { %v326_v40 = vsel %vm325_vm3, %v315_v31, %v324_v38 }
 0x114   : > { %v329_v41 = vsel %vm327_vm4, %v328_v39, %v326_v40 }
 0x115   : > { %332 = vst.msk [vmem:[%s1122_s6 + $0x8] sm:$0xff] %vm330_vm0, %v329_v41 }
 0x116   : > { %s1193_s19 = smov (!%p342_p8, %s341_s19), 2 }
 0x117   : > { %s629_s26 = sshll.u32 %s1193_s19, 7 }
 0x118   : > { %p632_p3 = scmp.eq.s32.totalorder %s629_s26, 0 }
 0x119   : > { %s1139_s22 = sshrl.u32 (!%p632_p3), %s1193_s19, 1 }
 0x11a   : > { %350 = sbr.rel (%p632_p3) target bundleno = 317 (0x13d), region = 52  ;;  %p633_p9 = scmp.le.s32.totalorder (!%p632_p3), %s1139_s22, 0 }
 0x11f   : > { %537 = sbr.rel (%p633_p9) target bundleno = 300 (0x12c), region = 143  ;;  %s919_s12 = smov (!%p633_p9), %s1133_s25  }
 0x120   : > { %s923_s28 = smov (!%p633_p9), %s1122_s6   ;;  %s927_s30 = smov (!%p633_p9), 0  }
 0x121   : > { %s931_s3 = smov (!%p633_p9), 0  }
 0x124 LB: >> { %v415_v42 = vld [vmem:[%s925_s28] sm:$0xff]  ;;  %v417_v43 = vld [vmem:[%s925_s28 + $0x8] sm:$0xff]  ;;  %s419_s4 = sadd.s32 1, %s929_s30  ;;  %s409_s3 = sadd.s32 1, %s933_s3   ;;  %s933_s3 = sphi %s931_s3, %s409_s3   ;;  %s929_s30 = sphi %s927_s30, %s928_s30   ;;  %s925_s28 = sphi %s923_s28, %s424_s28   ;;  %s921_s12 = sphi %s919_s12, %s425_s12  }
 0x125   : >> { %416 = vst [vmem:[%s921_s12] sm:$0xff] %v415_v42  ;;  %418 = vst [vmem:[%s921_s12 + $0x8] sm:$0xff] %v417_v43  ;;  %p420_p6 = scmp.ge.s32.totalorder %s419_s4, %s1139_s22  ;;  %p408_p7 = scmp.ge.s32.totalorder %s409_s3, %s1139_s22 }
 0x127   : >> { %s1195_s4 = smov (%p420_p6, %s419_s4), 0  ;;  %411 = sbr.rel (!%p408_p7) target bundleno = 292 (0x124), region = 149 }
 0x128   : >> { %s634_s5 = sshll.u32 %s1195_s4, 4  ;;  %s928_s30 = smov %s1195_s4  }
 0x129   : >> { %s424_s28 = scalar_lea.vmem %s1122_s6, %s634_s5 [#allocation8]   ;;  %s425_s12 = scalar_lea.vmem %s1133_s25, %s634_s5  }
 0x12c PF: > { %s1149_s9 = sand.u32 1, %s1193_s19   ;;  %s651_s27 = sshll.u32 %s1139_s22, 4 }
 0x12d   : > { %s430_s18 = scalar_lea.vmem %s1122_s6, %s651_s27 [#allocation8]   ;;  %s432_s29 = scalar_lea.vmem %s1133_s25, %s651_s27  }
 0x12e   : > { %p639_p10 = scmp.le.s32.totalorder %s1149_s9, 0 }
 0x12f   : > { %s935_s8 = smov (!%p639_p10), %s432_s29   ;;  %s939_s15 = smov (!%p639_p10), %s430_s18  }
 0x130   : > { %551 = sbr.rel (%p639_p10) target bundleno = 317 (0x13d), region = 154  ;;  %s943_s20 = smov (!%p639_p10), 0  }
 0x131   : > { %s947_s7 = smov (!%p639_p10), 0  }
 0x135 LB: >> { %v442_v44 = vld [vmem:[%s941_s15] sm:$0xff]  ;;  %s444_s17 = sadd.s32 1, %s945_s20  ;;  %s436_s7 = sadd.s32 1, %s949_s7   ;;  %s949_s7 = sphi %s947_s7, %s436_s7   ;;  %s945_s20 = sphi %s943_s20, %s944_s20   ;;  %s941_s15 = sphi %s939_s15, %s449_s15   ;;  %s937_s8 = sphi %s935_s8, %s450_s8  }
 0x136   : >> { %443 = vst [vmem:[%s937_s8] sm:$0xff] %v442_v44  ;;  %p445_p11 = scmp.ge.s32.totalorder %s444_s17, %s1149_s9  ;;  %p435_p13 = scmp.ge.s32.totalorder %s436_s7, %s1149_s9 }
 0x138   : >> { %s1197_s17 = smov (%p445_p11, %s444_s17), 0  ;;  %438 = sbr.rel (!%p435_p13) target bundleno = 309 (0x135), region = 160 }
 0x139   : >> { %s640_s6 = sshll.u32 %s1197_s17, 3  ;;  %s944_s20 = smov %s1197_s17  }
 0x13a   : >> { %s449_s15 = scalar_lea.vmem %s430_s18, %s640_s6 [#allocation8]   ;;  %s450_s8 = scalar_lea.vmem %s432_s29, %s640_s6  }
 0x13d PF: > { %s18_s14 = sadd.s32 1, %s917_s14   ;;  %s1181_s9 = smov %s901_s10 }
 0x13e   : > { %p15_p0 = scmp.ge.s32.totalorder %s18_s14, 4   ;;  %s1182_s10 = smov %s905_s11 }
 0x13f   : > { %s1183_s11 = smov %s1020_s21  ;;  %s1184_s12 = smov %s913_s13 }
 0x140   : > { %s1185_s13 = smov %s1187_s16  ;;  %17 = sbr.rel (!%p15_p0) target bundleno = 6 (0x6), region = 171 }
 0x145   :  { %466 = vsyncpa [#allocation5], 1 }
 0x146   :  { %468 = vsyncpa [#allocation5 + $0x1], 1 }
 0x147   :  { %469 = vsyncpa [#allocation7], 1 }
 0x148   :  { %471 = vsyncpa [#allocation7 + $0x1], 1 }

</bundles_post_ra>
